<compile_context>
chip_gen: v6e
topology: v6e:2x2x1
jax: 0.10.0
libtpu: 0.0.40
codegen_flags: <defaults>
</compile_context>

<pallas_src>
import functools

import jax
import jax.numpy as jnp
from jax.experimental import pallas as pl
from jax.experimental.pallas import tpu as pltpu

_LANES = 128
_SUBLANES = 8


def _round_up(n, m):
    return (n + m - 1) // m * m


def _pad2d(a, rows, cols):
    """Zero-pad a 2-D array up to (rows, cols)."""
    out = jnp.zeros((rows, cols), a.dtype)
    return out.at[: a.shape[0], : a.shape[1]].set(a)


def _mlp_kernel(x_ref,
                w1_ref, b1_ref,
                w2_ref, b2_ref,
                w3_ref, b3_ref,
                w5_ref, b5_ref,
                w6_ref, b6_ref,
                o_ref, *, compute_dtype):
    f32 = jnp.float32
    x = x_ref[...].astype(compute_dtype)          # cast in-kernel (free on VPU)

    # fc1 + ReLU : (b_tile, n_features) @ (n_features, 128)
    h = jnp.dot(x, w1_ref[...], preferred_element_type=f32) + b1_ref[...]
    h = jnp.maximum(h, 0.0).astype(compute_dtype)

    # fc2 + ReLU : 128 -> 64  (zero-padded to 128 lanes; exact through ReLU)
    h = jnp.dot(h, w2_ref[...], preferred_element_type=f32) + b2_ref[...]
    h = jnp.maximum(h, 0.0).astype(compute_dtype)

    # fc3 + ReLU : 64 -> 16 (padded)
    h = jnp.dot(h, w3_ref[...], preferred_element_type=f32) + b3_ref[...]
    h = jnp.maximum(h, 0.0).astype(compute_dtype)

    # fc5 + ReLU : 16 -> 4 (padded)
    h = jnp.dot(h, w5_ref[...], preferred_element_type=f32) + b5_ref[...]
    h = jnp.maximum(h, 0.0).astype(compute_dtype)

    # fc6 + Sigmoid : 4 -> 1.  Only column 0 of the padded matmul is real, so
    # slice before the bias add; exp/divide touch one value per row and the
    # output block is (b_tile, 1).
    z = jnp.dot(h, w6_ref[...], preferred_element_type=f32)[:, :1] + b6_ref[...]
    o_ref[...] = 1.0 / (1.0 + jnp.exp(-z))        # exp on EUP, exact divide


def net_forward(x, params, *, b_tile=2048, use_bf16=True):
    """Forward pass of `Net`.

    x: [B, n_features] float32.
    params: dict with w{1,2,3,5,6}: [fan_in, fan_out], b{...}: [1, fan_out].
    use_bf16: cast matmul inputs to bfloat16 (f32 accumulation).  Set False
      for an f32-exact path.
    """
    B, n_features = x.shape
    wdt = jnp.bfloat16 if use_bf16 else jnp.float32

    # ---- batch tiling ---------------------------------------------------
    # >= 2 grid steps when B allows (so v7x megacore uses both TensorCores).
    half = _round_up(max((B + 1) // 2, 1), _SUBLANES)
    b_tile = max(_SUBLANES, min(_round_up(int(b_tile), _SUBLANES), half))
    # VMEM cap (v7x has 64 MiB/TC): double-buffered x tile + live f32 temps.
    per_row = 2 * 4 * n_features + 8 * _LANES * 4 + 8
    max_bt = max(_SUBLANES, ((20 << 20) // per_row) // _SUBLANES * _SUBLANES)
    b_tile = min(b_tile, max_bt)
    b_pad = _round_up(B, b_tile)
    grid = (b_pad // b_tile,)

    # Pad only the batch, and only when needed.  The feature dim is passed at
    # its natural width (block last dim == full array dim), so there is no
    # wrapper-side x copy and x is read from HBM exactly once.
    x_in = x if b_pad == B else jnp.pad(x, ((0, b_pad - B), (0, 0)))

    # Resident parameters: lane-padded to 128 (exact through ReLU), weights in
    # the matmul compute dtype, biases kept f32 (added to the f32 accumulator).
    w1 = params["w1"].astype(wdt)                          # (n_features, 128)
    b1 = params["b1"]                                      # (1, 128)
    w2 = _pad2d(params["w2"].astype(wdt), _LANES, _LANES)
    b2 = _pad2d(params["b2"], 1, _LANES)
    w3 = _pad2d(params["w3"].astype(wdt), _LANES, _LANES)
    b3 = _pad2d(params["b3"], 1, _LANES)
    w5 = _pad2d(params["w5"].astype(wdt), _LANES, _LANES)
    b5 = _pad2d(params["b5"], 1, _LANES)
    w6 = _pad2d(params["w6"].astype(wdt), _LANES, _LANES)
    b6 = params["b6"]                                      # (1, 1)

    def resident(a):
        # Full-array block, always block (0, 0) -> DMA'd once, stays in VMEM.
        return pl.BlockSpec(a.shape, lambda i: (0, 0))

    in_specs = [
        pl.BlockSpec((b_tile, n_features), lambda i: (i, 0)),   # x tile
        resident(w1), resident(b1),
        resident(w2), resident(b2),
        resident(w3), resident(b3),
        resident(w5), resident(b5),
        resident(w6), resident(b6),
    ]
    out_spec = pl.BlockSpec((b_tile, 1), lambda i: (i, 0))

    # Advisory cost estimate + explicit VMEM budget (never the full 64 MiB).
    flops = 2 * B * (n_features * 128 + 128 * 64 + 64 * 16 + 16 * 4 + 4 * 1)
    w_bytes = sum(int(a.size) * a.dtype.itemsize
                  for a in (w1, w2, w3, w5, w6, b1, b2, b3, b5, b6))
    bytes_accessed = B * n_features * 4 + w_bytes + B * 4
    vmem_need = (2 * w_bytes                              # resident params (x2 buf)
                 + 2 * b_tile * (n_features * 4 + 4)      # x / out tiles (x2 buf)
                 + 8 * b_tile * _LANES * 4                # live intermediates
                 + (2 << 20))                             # headroom
    vmem_limit = int(min(max(2 * vmem_need, 16 << 20), 40 << 20))

    out = pl.pallas_call(
        functools.partial(_mlp_kernel, compute_dtype=wdt),
        grid=grid,
        in_specs=in_specs,
        out_specs=out_spec,
        out_shape=jax.ShapeDtypeStruct((b_pad, 1), jnp.float32),
        compiler_params=pltpu.CompilerParams(
            dimension_semantics=("parallel",),
            vmem_limit_bytes=vmem_limit,
        ),
        cost_estimate=pl.CostEstimate(
            flops=flops, transcendentals=b_pad, bytes_accessed=bytes_accessed),
    )(x_in, w1, b1, w2, b2, w3, b3, w5, b5, w6, b6)

    return out if b_pad == B else out[:B]


def init_params(key, n_features):
    """PyTorch nn.Linear-style init; weights stored transposed as [in, out]."""
    dims = [(n_features, 128), (128, 64), (64, 16), (16, 4), (4, 1)]
    names = ["1", "2", "3", "5", "6"]
    params = {}
    for name, (fan_in, fan_out) in zip(names, dims):
        key, kw, kb = jax.random.split(key, 3)
        bound = 1.0 / jnp.sqrt(fan_in)
        params[f"w{name}"] = jax.random.uniform(
            kw, (fan_in, fan_out), jnp.float32, -bound, bound)
        params[f"b{name}"] = jax.random.uniform(
            kb, (1, fan_out), jnp.float32, -bound, bound)
    return params


def net_reference(x, params):
    """Plain-JAX reference of the same forward pass."""
    h = jnp.maximum(x @ params["w1"] + params["b1"], 0.0)
    h = jnp.maximum(h @ params["w2"] + params["b2"], 0.0)
    h = jnp.maximum(h @ params["w3"] + params["b3"], 0.0)
    h = jnp.maximum(h @ params["w5"] + params["b5"], 0.0)
    z = h @ params["w6"] + params["b6"]
    return jax.nn.sigmoid(z)


if __name__ == "__main__":
    key = jax.random.PRNGKey(0)
    B, n_features = 24, 32   # small shapes; tiling gives 2 batch tiles of 16

    key, kx = jax.random.split(key)
    x = jax.random.normal(kx, (B, n_features), jnp.float32)
    params = init_params(key, n_features)

    ref = net_reference(x, params)

    # f32 path: bit-faithful to the PyTorch module.
    out_f32 = jax.block_until_ready(net_forward(x, params, use_bf16=False))
    assert out_f32.shape == (B, 1), out_f32.shape
    assert jnp.allclose(out_f32, ref, atol=1e-5, rtol=1e-5), "f32 mismatch"

    # Default bf16-matmul path (perf path; f32 accumulation on the MXU).
    out = jax.block_until_ready(net_forward(x, params))
    assert out.shape == (B, 1), out.shape
    assert jnp.allclose(out, ref, atol=3e-2, rtol=3e-2), "bf16 mismatch"

    print("KERNEL_OK")
</pallas_src>

<mosaic_0001>
module attributes {stable_mosaic.version = 11 : i64} {
  func.func @_mlp_kernel(%arg0: i32, %arg1: memref<16x32xf32, #tpu.memory_space<vmem>>, %arg2: memref<32x128xf32, #tpu.memory_space<vmem>>, %arg3: memref<1x128xf32, #tpu.memory_space<vmem>>, %arg4: memref<128x128xf32, #tpu.memory_space<vmem>>, %arg5: memref<1x128xf32, #tpu.memory_space<vmem>>, %arg6: memref<128x128xf32, #tpu.memory_space<vmem>>, %arg7: memref<1x128xf32, #tpu.memory_space<vmem>>, %arg8: memref<128x128xf32, #tpu.memory_space<vmem>>, %arg9: memref<1x128xf32, #tpu.memory_space<vmem>>, %arg10: memref<128x128xf32, #tpu.memory_space<vmem>>, %arg11: memref<1x1xf32, #tpu.memory_space<vmem>>, %arg12: memref<16x1xf32, #tpu.memory_space<vmem>>) attributes {dimension_semantics = [#tpu.dimension_semantics<parallel>], iteration_bounds = array<i64: 2>, scalar_prefetch = 0 : i64, scratch_operands = 0 : i64, tpu.core_type = #tpu.core_type<tc>, window_params = [{transform_indices = @transform_0, window_bounds = array<i64: 16, 32>}, {pipeline_mode = #tpu.pipeline_mode<synchronous>, transform_indices = @transform_1, window_bounds = array<i64: 32, 128>}, {pipeline_mode = #tpu.pipeline_mode<synchronous>, transform_indices = @transform_2, window_bounds = array<i64: 1, 128>}, {pipeline_mode = #tpu.pipeline_mode<synchronous>, transform_indices = @transform_3, window_bounds = array<i64: 128, 128>}, {pipeline_mode = #tpu.pipeline_mode<synchronous>, transform_indices = @transform_4, window_bounds = array<i64: 1, 128>}, {pipeline_mode = #tpu.pipeline_mode<synchronous>, transform_indices = @transform_5, window_bounds = array<i64: 128, 128>}, {pipeline_mode = #tpu.pipeline_mode<synchronous>, transform_indices = @transform_6, window_bounds = array<i64: 1, 128>}, {pipeline_mode = #tpu.pipeline_mode<synchronous>, transform_indices = @transform_7, window_bounds = array<i64: 128, 128>}, {pipeline_mode = #tpu.pipeline_mode<synchronous>, transform_indices = @transform_8, window_bounds = array<i64: 1, 128>}, {pipeline_mode = #tpu.pipeline_mode<synchronous>, transform_indices = @transform_9, window_bounds = array<i64: 128, 128>}, {pipeline_mode = #tpu.pipeline_mode<synchronous>, transform_indices = @transform_10, window_bounds = array<i64: 1, 1>}, {transform_indices = @transform_11, window_bounds = array<i64: 16, 1>}]} {
    %c0 = arith.constant 0 : index
    %c0_0 = arith.constant 0 : index
    %0 = vector.load %arg1[%c0, %c0_0] : memref<16x32xf32, #tpu.memory_space<vmem>>, vector<16x32xf32>
    %c0_1 = arith.constant 0 : index
    %c0_2 = arith.constant 0 : index
    %1 = vector.load %arg2[%c0_1, %c0_2] : memref<32x128xf32, #tpu.memory_space<vmem>>, vector<32x128xf32>
    %cst = arith.constant dense<0.000000e+00> : vector<16x128xf32>
    %2 = tpu.matmul %0, %1, %cst {dimension_numbers = #tpu.dot_dimension_numbers<[1], [0], [0], [1], [0, 0, 1, 1], [], []>} : vector<16x32xf32>, vector<32x128xf32>, vector<16x128xf32> -> vector<16x128xf32>
    %c0_3 = arith.constant 0 : index
    %c0_4 = arith.constant 0 : index
    %3 = vector.load %arg3[%c0_3, %c0_4] : memref<1x128xf32, #tpu.memory_space<vmem>>, vector<1x128xf32>
    %4 = vector.broadcast %3 : vector<1x128xf32> to vector<16x128xf32>
    %5 = arith.addf %2, %4 : vector<16x128xf32>
    %cst_5 = arith.constant 0.000000e+00 : f32
    %6 = vector.broadcast %cst_5 : f32 to vector<16x128xf32>
    %7 = arith.maximumf %5, %6 : vector<16x128xf32>
    %c0_6 = arith.constant 0 : index
    %c0_7 = arith.constant 0 : index
    %8 = vector.load %arg4[%c0_6, %c0_7] : memref<128x128xf32, #tpu.memory_space<vmem>>, vector<128x128xf32>
    %cst_8 = arith.constant dense<0.000000e+00> : vector<16x128xf32>
    %9 = tpu.matmul %7, %8, %cst_8 {dimension_numbers = #tpu.dot_dimension_numbers<[1], [0], [0], [1], [0, 0, 1, 1], [], []>} : vector<16x128xf32>, vector<128x128xf32>, vector<16x128xf32> -> vector<16x128xf32>
    %c0_9 = arith.constant 0 : index
    %c0_10 = arith.constant 0 : index
    %10 = vector.load %arg5[%c0_9, %c0_10] : memref<1x128xf32, #tpu.memory_space<vmem>>, vector<1x128xf32>
    %11 = vector.broadcast %10 : vector<1x128xf32> to vector<16x128xf32>
    %12 = arith.addf %9, %11 : vector<16x128xf32>
    %cst_11 = arith.constant 0.000000e+00 : f32
    %13 = vector.broadcast %cst_11 : f32 to vector<16x128xf32>
    %14 = arith.maximumf %12, %13 : vector<16x128xf32>
    %c0_12 = arith.constant 0 : index
    %c0_13 = arith.constant 0 : index
    %15 = vector.load %arg6[%c0_12, %c0_13] : memref<128x128xf32, #tpu.memory_space<vmem>>, vector<128x128xf32>
    %cst_14 = arith.constant dense<0.000000e+00> : vector<16x128xf32>
    %16 = tpu.matmul %14, %15, %cst_14 {dimension_numbers = #tpu.dot_dimension_numbers<[1], [0], [0], [1], [0, 0, 1, 1], [], []>} : vector<16x128xf32>, vector<128x128xf32>, vector<16x128xf32> -> vector<16x128xf32>
    %c0_15 = arith.constant 0 : index
    %c0_16 = arith.constant 0 : index
    %17 = vector.load %arg7[%c0_15, %c0_16] : memref<1x128xf32, #tpu.memory_space<vmem>>, vector<1x128xf32>
    %18 = vector.broadcast %17 : vector<1x128xf32> to vector<16x128xf32>
    %19 = arith.addf %16, %18 : vector<16x128xf32>
    %cst_17 = arith.constant 0.000000e+00 : f32
    %20 = vector.broadcast %cst_17 : f32 to vector<16x128xf32>
    %21 = arith.maximumf %19, %20 : vector<16x128xf32>
    %c0_18 = arith.constant 0 : index
    %c0_19 = arith.constant 0 : index
    %22 = vector.load %arg8[%c0_18, %c0_19] : memref<128x128xf32, #tpu.memory_space<vmem>>, vector<128x128xf32>
    %cst_20 = arith.constant dense<0.000000e+00> : vector<16x128xf32>
    %23 = tpu.matmul %21, %22, %cst_20 {dimension_numbers = #tpu.dot_dimension_numbers<[1], [0], [0], [1], [0, 0, 1, 1], [], []>} : vector<16x128xf32>, vector<128x128xf32>, vector<16x128xf32> -> vector<16x128xf32>
    %c0_21 = arith.constant 0 : index
    %c0_22 = arith.constant 0 : index
    %24 = vector.load %arg9[%c0_21, %c0_22] : memref<1x128xf32, #tpu.memory_space<vmem>>, vector<1x128xf32>
    %25 = vector.broadcast %24 : vector<1x128xf32> to vector<16x128xf32>
    %26 = arith.addf %23, %25 : vector<16x128xf32>
    %cst_23 = arith.constant 0.000000e+00 : f32
    %27 = vector.broadcast %cst_23 : f32 to vector<16x128xf32>
    %28 = arith.maximumf %26, %27 : vector<16x128xf32>
    %c0_24 = arith.constant 0 : index
    %c0_25 = arith.constant 0 : index
    %29 = vector.load %arg10[%c0_24, %c0_25] : memref<128x128xf32, #tpu.memory_space<vmem>>, vector<128x128xf32>
    %cst_26 = arith.constant dense<0.000000e+00> : vector<16x128xf32>
    %30 = tpu.matmul %28, %29, %cst_26 {dimension_numbers = #tpu.dot_dimension_numbers<[1], [0], [0], [1], [0, 0, 1, 1], [], []>} : vector<16x128xf32>, vector<128x128xf32>, vector<16x128xf32> -> vector<16x128xf32>
    %31 = vector.extract_strided_slice %30 {offsets = [0, 0], sizes = [16, 1], strides = [1, 1]} : vector<16x128xf32> to vector<16x1xf32>
    %c0_27 = arith.constant 0 : index
    %c0_28 = arith.constant 0 : index
    %32 = vector.load %arg11[%c0_27, %c0_28] : memref<1x1xf32, #tpu.memory_space<vmem>>, vector<1x1xf32>
    %33 = vector.broadcast %32 : vector<1x1xf32> to vector<16x1xf32>
    %34 = arith.addf %31, %33 : vector<16x1xf32>
    %cst_29 = arith.constant 0.000000e+00 : f32
    %35 = vector.broadcast %cst_29 : f32 to vector<16x1xf32>
    %36 = arith.subf %35, %34 : vector<16x1xf32>
    %37 = math.exp %36 : vector<16x1xf32>
    %cst_30 = arith.constant 1.000000e+00 : f32
    %38 = vector.broadcast %cst_30 : f32 to vector<16x1xf32>
    %39 = arith.addf %38, %37 : vector<16x1xf32>
    %cst_31 = arith.constant 1.000000e+00 : f32
    %40 = vector.broadcast %cst_31 : f32 to vector<16x1xf32>
    %41 = arith.divf %40, %39 : vector<16x1xf32>
    %c0_32 = arith.constant 0 : index
    %c0_33 = arith.constant 0 : index
    %42 = vector.load %arg12[%c0_32, %c0_33] : memref<16x1xf32, #tpu.memory_space<vmem>>, vector<16x1xf32>
    tpu.vector_store %arg12[%c0_32, %c0_33], %41 {strides = array<i32>} : memref<16x1xf32, #tpu.memory_space<vmem>>, vector<16x1xf32>,
    return
  }
  func.func @transform_0(%arg0: i32) -> (i32, i32) {
    %c0_i32 = arith.constant 0 : i32
    %c0_i32_0 = arith.constant 0 : i32
    return %arg0, %c0_i32 : i32, i32
  }
  func.func @transform_1(%arg0: i32) -> (i32, i32) {
    %c0_i32 = arith.constant 0 : i32
    %c0_i32_0 = arith.constant 0 : i32
    %c0_i32_1 = arith.constant 0 : i32
    return %c0_i32, %c0_i32_0 : i32, i32
  }
  func.func @transform_2(%arg0: i32) -> (i32, i32) {
    %c0_i32 = arith.constant 0 : i32
    %c0_i32_0 = arith.constant 0 : i32
    %c0_i32_1 = arith.constant 0 : i32
    return %c0_i32, %c0_i32_0 : i32, i32
  }
  func.func @transform_3(%arg0: i32) -> (i32, i32) {
    %c0_i32 = arith.constant 0 : i32
    %c0_i32_0 = arith.constant 0 : i32
    %c0_i32_1 = arith.constant 0 : i32
    return %c0_i32, %c0_i32_0 : i32, i32
  }
  func.func @transform_4(%arg0: i32) -> (i32, i32) {
    %c0_i32 = arith.constant 0 : i32
    %c0_i32_0 = arith.constant 0 : i32
    %c0_i32_1 = arith.constant 0 : i32
    return %c0_i32, %c0_i32_0 : i32, i32
  }
  func.func @transform_5(%arg0: i32) -> (i32, i32) {
    %c0_i32 = arith.constant 0 : i32
    %c0_i32_0 = arith.constant 0 : i32
    %c0_i32_1 = arith.constant 0 : i32
    return %c0_i32, %c0_i32_0 : i32, i32
  }
  func.func @transform_6(%arg0: i32) -> (i32, i32) {
    %c0_i32 = arith.constant 0 : i32
    %c0_i32_0 = arith.constant 0 : i32
    %c0_i32_1 = arith.constant 0 : i32
    return %c0_i32, %c0_i32_0 : i32, i32
  }
  func.func @transform_7(%arg0: i32) -> (i32, i32) {
    %c0_i32 = arith.constant 0 : i32
    %c0_i32_0 = arith.constant 0 : i32
    %c0_i32_1 = arith.constant 0 : i32
    return %c0_i32, %c0_i32_0 : i32, i32
  }
  func.func @transform_8(%arg0: i32) -> (i32, i32) {
    %c0_i32 = arith.constant 0 : i32
    %c0_i32_0 = arith.constant 0 : i32
    %c0_i32_1 = arith.constant 0 : i32
    return %c0_i32, %c0_i32_0 : i32, i32
  }
  func.func @transform_9(%arg0: i32) -> (i32, i32) {
    %c0_i32 = arith.constant 0 : i32
    %c0_i32_0 = arith.constant 0 : i32
    %c0_i32_1 = arith.constant 0 : i32
    return %c0_i32, %c0_i32_0 : i32, i32
  }
  func.func @transform_10(%arg0: i32) -> (i32, i32) {
    %c0_i32 = arith.constant 0 : i32
    %c0_i32_0 = arith.constant 0 : i32
    %c0_i32_1 = arith.constant 0 : i32
    return %c0_i32, %c0_i32_0 : i32, i32
  }
  func.func @transform_11(%arg0: i32) -> (i32, i32) {
    %c0_i32 = arith.constant 0 : i32
    %c0_i32_0 = arith.constant 0 : i32
    return %arg0, %c0_i32 : i32, i32
  }
}

</mosaic_0001>

<bundles_post_ra>
// kernel: tpu_custom_call.1
= control target key start
LH: loop header
LB: loop body
LE: loop exit
PB: predicated region body
PF: predicated region fallthrough
CT: control target
= control target key end

     0   :  { %s1971_s0 = inlined_call_operand.hbm [shape: f32[32,32], index: 0, kind: input, shape index: {}]   ;;  %s1972_s1 = inlined_call_operand.hbm [shape: f32[32,128], index: 1, kind: input, shape index: {}]   ;;  %s1973_s2 = inlined_call_operand.vmem [shape: f32[1,128], index: 2, kind: input, shape index: {}]   ;;  %s1974_s3 = inlined_call_operand.hbm [shape: f32[128,128], index: 3, kind: input, shape index: {}]   ;;  %s1975_s4 = inlined_call_operand.vmem [shape: f32[1,128], index: 4, kind: input, shape index: {}]   ;;  %s1976_s5 = inlined_call_operand.hbm [shape: f32[128,128], index: 5, kind: input, shape index: {}]   ;;  %s1977_s6 = inlined_call_operand.vmem [shape: f32[1,128], index: 6, kind: input, shape index: {}]   ;;  %s1978_s7 = inlined_call_operand.hbm [shape: f32[128,128], index: 7, kind: input, shape index: {}]   ;;  %s1979_s8 = inlined_call_operand.vmem [shape: f32[1,128], index: 8, kind: input, shape index: {}]   ;;  %s1980_s9 = inlined_call_operand.hbm [shape: f32[128,128], index: 9, kind: input, shape index: {}]   ;;  %s1981_s10 = inlined_call_operand.<no memory space> [shape: f32[1,1], index: 10, kind: input, shape index: {}]   ;;  %s1982_s11 = inlined_call_operand.vmem [shape: f32[32,1], index: 11, kind: output, shape index: {}]  }
   0x1   :  { %1990 = sst [smem:[#allocation17_spill]] %s1972_s1  ;;  %v16_v0 = vstv %s1981_s10 }
   0x2   :  { %17 = vst [vmem:[#allocation2] sm:$0x1] %v16_v0 }
   0x3   :  { %18 = vsyncpa [#allocation4], 0 }
   0x4   :  { %20 = vsyncpa [#allocation4 + $0x1], 0 }
   0x5   :  { %21 = vsyncpa [#allocation6], 0 }
   0x6   :  { %22 = vsyncpa [#allocation9], 0 }
   0x7   :  { %23 = vsyncpa [#allocation12], 0  ;;  %s1748_s19 = smov 0   ;;  %s1750_s20 = smov 0  }
   0x8   :  { %s1752_s21 = smov 0   ;;  %s1754_s22 = smov 0  }
   0x9 LB: > { %s1677_s10 = smov [#allocation5]   ;;  %s1983_s24 = sadd.s32 4294967295, %s1675_s22   ;;  %s1675_s22 = sphi %s1754_s22, %s2007_s22   ;;  %s1671_s21 = sphi %s1752_s21, %s2006_s21   ;;  %s1667_s20 = sphi %s1750_s20, %s2005_s20   ;;  %s1663_s19 = sphi %s1748_s19, %s2004_s19  }
   0xa   : > { %s308_s23 = sshll.u32 %s1677_s10, 4  ;;  %p1113_p0 = scmp.ge.s32.totalorder %s1675_s22, 1  ;;  %s309_s23 = int_to_ptr.vmem [resolvable:$true] %s308_s23 }
   0xb   : > { %p1772_p1 = scmp.eq.s32.totalorder %s1983_s24, 0  ;;  %p296_p2 = scmp.lt.s32.totalorder %s1675_s22, 3 }
   0xc   : > { %s1678_s27 = smov [#allocation8]   ;;  %s1679_s30 = smov [#allocation7]  }
   0xd   : > { %s1991_s25 = scalar_select %p1772_p1, 1, 0 }
   0xe   : > { %p1777_p3 = pnand %p1113_p0, %p296_p2  ;;  %s340_s28 = sshll.u32 %s1678_s27, 4  ;;  %s1789_s28 = int_to_ptr.vmem [resolvable:$true] %s340_s28 }
   0xf   : > { %s324_s12 = sshll.u32 %s1679_s30, 4  ;;  %s1482_s14 = scalar_lea.vmem %s309_s23, 512  ;;  %s1791_s12 = int_to_ptr.vmem [resolvable:$true] %s324_s12 }
  0x10   : > { %s1992_s26 = scalar_select %p1777_p3, 1, 0 }
  0x11   : > { %p1393_p4 = pneg %p1777_p3  ;;  %p1483_p7 = scmp.ne.s32.totalorder %s309_s23, %s1482_s14 }
  0x12   : > { %p1490_p10 = scmp.lt.s32.totalorder %s309_s23, %s309_s23  ;;  %p1491_p11 = scmp.lt.s32.totalorder %s1482_s14, %s1482_s14 }
  0x13   : > { %p1785_p5 = pnand %p1393_p4, %p1772_p1 }
  0x14   : > { %p1492_p12 = por %p1491_p11, %p1490_p10 }
  0x15   : > { %p1795_p6 = pneg %p1785_p5 }
  0x17   : > { %p1485_p8 = pnand %p1483_p7, %p1795_p6 }
  0x19   : > { %p1486_p9 = pneg %p1485_p8 }
  0x1b   : > { %p1493_p13 = pnand %p1492_p12, %p1486_p9 }
  0x1d   : > { %1496 = shalt.err (!%p1493_p13)
}
  0x1e   : > { %s1984_s15 = smov 128   ;;  %s1985_s16 = smov 8  }
  0x1f   : > { %s1995_s1 = sld [smem:[#allocation17_spill]]  ;;  %s1508_s10 = scalar_lea.vmem %s1789_s28, 2048 }
  0x20   : > { %p1509_p0 = scmp.ne.s32.totalorder %s1789_s28, %s1508_s10  ;;  %p1516_p7 = scmp.lt.s32.totalorder %s1789_s28, %s1789_s28 }
  0x21   : > { %p1517_p8 = scmp.lt.s32.totalorder %s1508_s10, %s1508_s10 }
  0x22   : > { %p1511_p2 = pnand %p1509_p0, %p1795_p6 }
  0x23   : > { %p1518_p9 = por %p1517_p8, %p1516_p7 }
  0x24   : > { %p1512_p4 = pneg %p1511_p2 }
  0x25   : > { %1396 = dma.hbm_to_vmem [thread:$0]  (!%p1785_p5), %s1995_s1, 512, %s309_s23, [#allocation6], %s1984_s15, %s1984_s15, %s1985_s16  }
  0x26   : > { %p1519_p10 = pnand %p1518_p9, %p1512_p4 }
  0x28   : > { %1522 = shalt.err (!%p1519_p10)
}
  0x29   : > { %1402 = dma.hbm_to_vmem [thread:$0]  (!%p1785_p5), %s1976_s5, 2048, %s1789_s28, [#allocation9], %s1984_s15, %s1984_s15, %s1985_s16  }
  0x2a   : > { %s1534_s23 = scalar_lea.vmem %s1791_s12, 2048  ;;  %p1542_p0 = scmp.lt.s32.totalorder %s1791_s12, %s1791_s12 }
  0x2b   : > { %p1535_p11 = scmp.ne.s32.totalorder %s1791_s12, %s1534_s23  ;;  %p1543_p2 = scmp.lt.s32.totalorder %s1534_s23, %s1534_s23 }
  0x2d   : > { %p1537_p12 = pnand %p1535_p11, %p1795_p6  ;;  %p1544_p4 = por %p1543_p2, %p1542_p0 }
  0x2f   : > { %p1538_p13 = pneg %p1537_p12 }
  0x31   : > { %p1545_p7 = pnand %p1544_p4, %p1538_p13 }
  0x33   : > { %1548 = shalt.err (!%p1545_p7)
}
  0x34   : > { %1399 = dma.hbm_to_vmem [thread:$0]  (!%p1785_p5), %s1974_s3, 2048, %s1791_s12, [#allocation6], %s1984_s15, %s1984_s15, %s1985_s16  }
  0x35   : > { %s1682_s28 = smov [#allocation10]   ;;  %s1683_s10 = smov [#allocation11]  }
  0x36   : > { %s356_s18 = sshll.u32 %s1682_s28, 4  ;;  %s372_s27 = sshll.u32 %s1683_s10, 4  ;;  %s357_s18 = int_to_ptr.vmem [resolvable:$true] %s356_s18  ;;  %s373_s27 = int_to_ptr.vmem [resolvable:$true] %s372_s27 }
  0x37   : > { %s1560_s30 = scalar_lea.vmem %s357_s18, 2048  ;;  %p1568_p11 = scmp.lt.s32.totalorder %s357_s18, %s357_s18 }
  0x38   : > { %p1561_p8 = scmp.ne.s32.totalorder %s357_s18, %s1560_s30  ;;  %p1569_p12 = scmp.lt.s32.totalorder %s1560_s30, %s1560_s30 }
  0x3a   : > { %p1563_p9 = pnand %p1561_p8, %p1795_p6  ;;  %p1570_p13 = por %p1569_p12, %p1568_p11 }
  0x3c   : > { %p1564_p10 = pneg %p1563_p9 }
  0x3e   : > { %p1571_p0 = pnand %p1570_p13, %p1564_p10 }
  0x40   : > { %1574 = shalt.err (!%p1571_p0)
}
  0x41   : > { %1405 = dma.hbm_to_vmem [thread:$0]  (!%p1785_p5), %s1978_s7, 2048, %s357_s18, [#allocation9], %s1984_s15, %s1984_s15, %s1985_s16  }
  0x42   : > { %s1586_s14 = scalar_lea.vmem %s373_s27, 2048  ;;  %p1594_p8 = scmp.lt.s32.totalorder %s373_s27, %s373_s27 }
  0x43   : > { %p1587_p2 = scmp.ne.s32.totalorder %s373_s27, %s1586_s14  ;;  %p1595_p9 = scmp.lt.s32.totalorder %s1586_s14, %s1586_s14 }
  0x45   : > { %p1589_p4 = pnand %p1587_p2, %p1795_p6  ;;  %p1596_p10 = por %p1595_p9, %p1594_p8 }
  0x47   : > { %p1590_p7 = pneg %p1589_p4 }
  0x49   : > { %p1597_p11 = pnand %p1596_p10, %p1590_p7 }
  0x4b   : > { %1600 = shalt.err (!%p1597_p11)
}
  0x4c   : > { %1408 = dma.hbm_to_vmem [thread:$0]  (!%p1785_p5), %s1980_s9, 2048, %s373_s27, [#allocation12], %s1984_s15, %s1984_s15, %s1985_s16  }
  0x4d   : > { %s1860_s29 = sadd.s32 1, %s1675_s22   ;;  %s36_s18 = sadd.s32 1, %s1671_s21 }
  0x4e   : > { %s33_s13 = ssub.s32 %s1675_s22, %s1860_s29  ;;  %p43_p12 = scmp.ne.s32.totalorder %s1671_s21, %s1667_s20 }
  0x4f   : > { %p34_p6 = scmp.eq.s32.totalorder %s33_s13, 0  ;;  %p44_p13 = scmp.eq.s32.totalorder %s1675_s22, 0 }
  0x50   : > { %p49_p0 = scmp.ne.s32.totalorder %s1667_s20, %s1663_s19  ;;  %p1418_p7 = scmp.lt.s32.totalorder %s1675_s22, 2 }
  0x51   : > { %s1871_s10 = scalar_select %p34_p6, %s1671_s21, %s36_s18  }
  0x52   : > { %p45_p2 = por %p44_p13, %p43_p12  ;;  %p1875_p4 = por %p1772_p1, %p49_p0 }
  0x53   : > { %s389_s12 = sand.u32 1, %s1671_s21   ;;  %s1141_s23 = sshll.u32 %s1675_s22, 8 }
  0x54   : > { %s1996_s30 = scalar_select %p1875_p4, 1, 0 }
  0x55   : > { %s1120_s27 = sshll.u32 %s389_s12, 4  ;;  %s1885_s28 = scalar_lea.hbm %s1971_s0, %s1141_s23 }
  0x56   : > { %s393_s19 = scalar_lea.vmem [#allocation3], %s1120_s27  ;;  %p1889_p5 = pnand %p1418_p7, %p45_p2 }
  0x57   : > { %s400_s13 = sshll.u32 %s393_s19, 4  ;;  %s1893_s24 = scalar_lea.sflag [#allocation4], %s389_s12  ;;  %s1887_s13 = int_to_ptr.vmem [resolvable:$true] %s400_s13 }
  0x58   : > { %s1601_s15 = scalar_lea.hbm %s1885_s28, 256  ;;  %p1603_p9 = pneg %p1889_p5 }
  0x59   : > { %p1602_p8 = scmp.ne.s32.totalorder %s1885_s28, %s1601_s15  ;;  %s1606_s27 = scalar_lea.hbm %s1971_s0, 512 }
  0x5a   : > { %p1607_p6 = scmp.lt.s32.totalorder %s1885_s28, %s1971_s0  ;;  %p1608_p12 = scmp.lt.s32.totalorder %s1606_s27, %s1601_s15 }
  0x5b   : > { %p1604_p10 = pnand %p1603_p9, %p1602_p8 }
  0x5c   : > { %p1609_p13 = por %p1608_p12, %p1607_p6 }
  0x5d   : > { %p1605_p11 = pneg %p1604_p10 }
  0x5f   : > { %p1610_p0 = pnand %p1609_p13, %p1605_p11 }
  0x61   : > { %1613 = shalt.err (!%p1610_p0)
}
  0x62   : > { %s1614_s12 = scalar_lea.vmem %s1887_s13, 256  ;;  %s1684_s16 = smov [#allocation3]  }
  0x63   : > { %p1615_p2 = scmp.ne.s32.totalorder %s1887_s13, %s1614_s12  ;;  %s1619_s1 = sshll.u32 %s1684_s16, 4  ;;  %s1620_s1 = int_to_ptr.vmem [resolvable:$false] %s1619_s1 }
  0x64   : > { %s1621_s23 = scalar_lea.vmem %s1620_s1, 512  ;;  %p1622_p10 = scmp.lt.s32.totalorder %s1887_s13, %s1620_s1 }
  0x65   : > { %p1617_p7 = pnand %p1615_p2, %p1603_p9  ;;  %p1623_p1 = scmp.lt.s32.totalorder %s1621_s23, %s1614_s12 }
  0x67   : > { %p1618_p8 = pneg %p1617_p7  ;;  %p1624_p4 = por %p1623_p1, %p1622_p10 }
  0x69   : > { %p1625_p3 = pnand %p1624_p4, %p1618_p8 }
  0x6b   : > { %1628 = shalt.err (!%p1625_p3)
}
  0x6c   : > { %s1998_s15 = smov 8   ;;  %s1999_s14 = smov 128  }
  0x6d   : > { %1412 = dma.hbm_to_vmem [thread:$0]  (!%p1889_p5), %s1885_s28, 256, %s1887_s13, %s1893_s24, %s1999_s14, %s1999_s14, %s1998_s15  }
  0x6e   : > { %p2000_p9 = scmp.ne.s32.totalorder %s1992_s26, 0 }
  0x6f   : > { %s414_s16 = sand.u32 (!%p2000_p9), 1, %s1667_s20   ;;  %p2001_p1 = scmp.ne.s32.totalorder (!%p2000_p9), %s1996_s30, 0 }
  0x70   : > { %412 = sbr.rel (%p2000_p9) target bundleno = 1167 (0x48f), region = 64  ;;  %s1920_s1 = sshll.u32 (!%p2000_p9), %s414_s16, 4 }
  0x71   : > { %s415_s27 = scalar_lea.sflag (!%p2000_p9), [#allocation4], %s414_s16  ;;  %s418_s17 = scalar_lea.vmem (!%p2000_p9), [#allocation3], %s1920_s1 }
  0x75   : > { %1646 = dma.done.wait (%p2001_p1), %s415_s27, 256  }
  0x76   : > { %1648 = vsyncadd (%p2001_p1), %s415_s27, 4294967040  ;;  %p2002_p3 = scmp.ne.s32.totalorder %s1991_s25, 0 }
  0x78   : > { %1650 = dma.done.wait (%p2002_p3), [#allocation6], 2560  }
  0x79   : > { %1652 = vsyncadd (%p2002_p3), [#allocation6], 4294964736 }
  0x7a   : > { %1654 = dma.done.wait (%p2002_p3), [#allocation9], 4096  }
  0x7b   : > { %1656 = vsyncadd (%p2002_p3), [#allocation9], 4294963200 }
  0x7c   : > { %1658 = dma.done.wait (%p2002_p3), [#allocation12], 2048  }
  0x7d   : > { %1660 = vsyncadd (%p2002_p3), [#allocation12], 4294965248  ;;  %vm497_vm0 = vcmask 261120   ;;  %v489_v1 = vld [vmem:[#allocation5 + $0x18] sm:$0xff]  ;;  %v488_v2 = vld [vmem:[#allocation5 + $0x10] sm:$0xff]  ;;  %s2003_s12 = sadd.s32 4294967295, %s1675_s22  }
  0x7e   : > { %1220 = vmatprep.subr.mxu0 %v489_v1  ;;  %v484_v3 = vld [vmem:[%s418_s17] sm:$0xff]  ;;  %v487_v4 = vld [vmem:[#allocation5 + $0x8] sm:$0xff]  ;;  %v596_v5 = vld [vmem:[#allocation7 + $0x78] sm:$0xff]  ;;  %s1130_s23 = sshll.u32 %s2003_s12, 1  ;;  %vm993_vm1 = vcmask 7168  }
  0x7f   : > { %1221 = vmatpush3.msra.mxu0 %v489_v1  ;;  %1228 = vmatprep.mubr.msk.f32.mxu0 %vm497_vm0, %v484_v3  ;;  %v595_v6 = vld [vmem:[#allocation7 + $0x70] sm:$0xff]  ;;  %v486_v7 = vld [vmem:[#allocation5] sm:$0xff]  ;;  %v594_v8 = vld [vmem:[#allocation7 + $0x68] sm:$0xff]  ;;  %p479_p4 = scmp.lt.s32.totalorder %s1130_s23, 3 }
  0x80   : > { %1222 = vmatprep.subr.mxu0 %v488_v2  ;;  %1231 = vmatprep.subr.mxu1 %v596_v5  ;;  %v485_v9 = vld [vmem:[%s418_s17 + $0x8] sm:$0xff]  ;;  %v593_v10 = vld [vmem:[#allocation7 + $0x60] sm:$0xff]  ;;  %v591_v12 = vld [vmem:[#allocation7 + $0x50] sm:$0xff] }
  0x81   : > { %1223 = vmatpush3.msra.mxu0 %v488_v2  ;;  %1232 = vmatpush3.msra.mxu1 %v596_v5  ;;  %v592_v11 = vld [vmem:[#allocation7 + $0x58] sm:$0xff]  ;;  %v590_v13 = vld [vmem:[#allocation7 + $0x48] sm:$0xff]  ;;  %v589_v14 = vld [vmem:[#allocation7 + $0x40] sm:$0xff]  ;;  %s2009_s23 = smov (!%p479_p4, %s1130_s23), 3 }
  0x82   : > { %1224 = vmatprep.subr.mxu0 %v487_v4  ;;  %1233 = vmatprep.subr.mxu1 %v595_v6  ;;  %v588_v15 = vld [vmem:[#allocation7 + $0x38] sm:$0xff]  ;;  %v587_v16 = vld [vmem:[#allocation7 + $0x30] sm:$0xff]  ;;  %v586_v17 = vld [vmem:[#allocation7 + $0x28] sm:$0xff]  ;;  %s1131_s15 = sshll.u32 %s2009_s23, 3 }
  0x83   : > { %1225 = vmatpush3.msra.mxu0 %v487_v4  ;;  %1234 = vmatpush3.msra.mxu1 %v595_v6  ;;  %v585_v18 = vld [vmem:[#allocation7 + $0x20] sm:$0xff]  ;;  %v584_v19 = vld [vmem:[#allocation7 + $0x18] sm:$0xff]  ;;  %v583_v20 = vld [vmem:[#allocation7 + $0x10] sm:$0xff]  ;;  %s482_s1 = scalar_lea.vmem %s1982_s11, %s1131_s15 }
  0x84   : > { %1226 = vmatprep.subr.mxu0 %v486_v7  ;;  %1235 = vmatprep.subr.mxu1 %v594_v8  ;;  %v582_v21 = vld [vmem:[#allocation7 + $0x8] sm:$0xff]  ;;  %v581_v22 = vld [vmem:[#allocation7] sm:$0xff]  ;;  %v696_v23 = vld [vmem:[#allocation8 + $0x78] sm:$0xff] }
  0x85   : > { %1227 = vmatpush3.msra.mxu0 %v486_v7  ;;  %1236 = vmatpush3.msra.mxu1 %v594_v8  ;;  %v695_v24 = vld [vmem:[#allocation8 + $0x70] sm:$0xff]  ;;  %v694_v25 = vld [vmem:[#allocation8 + $0x68] sm:$0xff]  ;;  %v693_v26 = vld [vmem:[#allocation8 + $0x60] sm:$0xff] }
  0x86   : > { %1229 = vmatmul.mubr.msk.f32.vlgmr.msra.gmra.mxu0 %vm497_vm0, %v485_v9  ;;  %1237 = vmatprep.subr.mxu1 %v593_v10  ;;  %v692_v27 = vld [vmem:[#allocation8 + $0x58] sm:$0xff]  ;;  %v691_v28 = vld [vmem:[#allocation8 + $0x50] sm:$0xff]  ;;  %v690_v29 = vld [vmem:[#allocation8 + $0x48] sm:$0xff] }
  0x87   : > { %1238 = vmatpush3.msra.mxu1 %v593_v10  ;;  %1266 = vmatprep.subr.mxu0 %v696_v23  ;;  %v689_v30 = vld [vmem:[#allocation8 + $0x40] sm:$0xff]  ;;  %v688_v31 = vld [vmem:[#allocation8 + $0x38] sm:$0xff]  ;;  %v687_v32 = vld [vmem:[#allocation8 + $0x30] sm:$0xff] }
  0x88   : > { %1239 = vmatprep.subr.mxu1 %v592_v11  ;;  %1267 = vmatpush3.msra.mxu0 %v696_v23  ;;  %v686_v33 = vld [vmem:[#allocation8 + $0x28] sm:$0xff]  ;;  %v685_v34 = vld [vmem:[#allocation8 + $0x20] sm:$0xff]  ;;  %v1132_v35 = vld [vmem:[%s1973_s2] ss:$0 sm:$0xff] }
  0x89   : > { %1240 = vmatpush3.msra.mxu1 %v592_v11  ;;  %1268 = vmatprep.subr.mxu0 %v695_v24  ;;  %v684_v42 = vld [vmem:[#allocation8 + $0x18] sm:$0xff]  ;;  %v683_v43 = vld [vmem:[#allocation8 + $0x10] sm:$0xff]  ;;  %v682_v44 = vld [vmem:[#allocation8 + $0x8] sm:$0xff] }
  0x8a   : > { %1241 = vmatprep.subr.mxu1 %v591_v12  ;;  %1269 = vmatpush3.msra.mxu0 %v695_v24  ;;  %v681_v45 = vld [vmem:[#allocation8] sm:$0xff]  ;;  %v796_v46 = vld [vmem:[#allocation10 + $0x78] sm:$0xff]  ;;  %v795_v47 = vld [vmem:[#allocation10 + $0x70] sm:$0xff] }
  0x8b   : > { %1242 = vmatpush3.msra.mxu1 %v591_v12  ;;  %1270 = vmatprep.subr.mxu0 %v694_v25  ;;  %v794_v48 = vld [vmem:[#allocation10 + $0x68] sm:$0xff]  ;;  %v793_v49 = vld [vmem:[#allocation10 + $0x60] sm:$0xff]  ;;  %v792_v50 = vld [vmem:[#allocation10 + $0x58] sm:$0xff] }
  0x8c   : > { %1243 = vmatprep.subr.mxu1 %v590_v13  ;;  %1271 = vmatpush3.msra.mxu0 %v694_v25  ;;  %v791_v51 = vld [vmem:[#allocation10 + $0x50] sm:$0xff]  ;;  %v790_v52 = vld [vmem:[#allocation10 + $0x48] sm:$0xff]  ;;  %v789_v53 = vld [vmem:[#allocation10 + $0x40] sm:$0xff] }
  0x8d   : > { %1244 = vmatpush3.msra.mxu1 %v590_v13  ;;  %1272 = vmatprep.subr.mxu0 %v693_v26  ;;  %v788_v54 = vld [vmem:[#allocation10 + $0x38] sm:$0xff]  ;;  %v787_v55 = vld [vmem:[#allocation10 + $0x30] sm:$0xff]  ;;  %v786_v56 = vld [vmem:[#allocation10 + $0x28] sm:$0xff] }
  0x8e   : > { %1245 = vmatprep.subr.mxu1 %v589_v14  ;;  %1273 = vmatpush3.msra.mxu0 %v693_v26  ;;  %v785_v57 = vld [vmem:[#allocation10 + $0x20] sm:$0xff]  ;;  %v1135_v58 = vld [vmem:[%s1975_s4] ss:$0 sm:$0xff]  ;;  %v783_v2 = vld [vmem:[#allocation10 + $0x10] sm:$0xff] }
  0x8f   : > { %1246 = vmatpush3.msra.mxu1 %v589_v14  ;;  %1274 = vmatprep.subr.mxu0 %v692_v27  ;;  %v784_v1 = vld [vmem:[#allocation10 + $0x18] sm:$0xff]  ;;  %v782_v3 = vld [vmem:[#allocation10 + $0x8] sm:$0xff]  ;;  %v781_v4 = vld [vmem:[#allocation10] sm:$0xff] }
  0x90   : > { %1247 = vmatprep.subr.mxu1 %v588_v15  ;;  %1275 = vmatpush3.msra.mxu0 %v692_v27  ;;  %v896_v5 = vld [vmem:[#allocation11 + $0x78] sm:$0xff]  ;;  %v895_v6 = vld [vmem:[#allocation11 + $0x70] sm:$0xff]  ;;  %v894_v7 = vld [vmem:[#allocation11 + $0x68] sm:$0xff] }
  0x91   : > { %1248 = vmatpush3.msra.mxu1 %v588_v15  ;;  %1276 = vmatprep.subr.mxu0 %v691_v28  ;;  %v893_v8 = vld [vmem:[#allocation11 + $0x60] sm:$0xff]  ;;  %v892_v9 = vld [vmem:[#allocation11 + $0x58] sm:$0xff]  ;;  %v891_v10 = vld [vmem:[#allocation11 + $0x50] sm:$0xff] }
  0x92   : > { %1249 = vmatprep.subr.mxu1 %v587_v16  ;;  %1277 = vmatpush3.msra.mxu0 %v691_v28  ;;  %v890_v11 = vld [vmem:[#allocation11 + $0x48] sm:$0xff]  ;;  %v889_v12 = vld [vmem:[#allocation11 + $0x40] sm:$0xff]  ;;  %v888_v13 = vld [vmem:[#allocation11 + $0x38] sm:$0xff] }
  0x93   : > { %1250 = vmatpush3.msra.mxu1 %v587_v16  ;;  %1278 = vmatprep.subr.mxu0 %v690_v29  ;;  %v887_v14 = vld [vmem:[#allocation11 + $0x30] sm:$0xff]  ;;  %v886_v15 = vld [vmem:[#allocation11 + $0x28] sm:$0xff]  ;;  %v885_v16 = vld [vmem:[#allocation11 + $0x20] sm:$0xff] }
  0x94   : > { %1251 = vmatprep.subr.mxu1 %v586_v17  ;;  %1279 = vmatpush3.msra.mxu0 %v690_v29  ;;  %v884_v24 = vld [vmem:[#allocation11 + $0x18] sm:$0xff]  ;;  %v883_v25 = vld [vmem:[#allocation11 + $0x10] sm:$0xff]  ;;  %v882_v26 = vld [vmem:[#allocation11 + $0x8] sm:$0xff] }
  0x95   : > { %1252 = vmatpush3.msra.mxu1 %v586_v17  ;;  %1280 = vmatprep.subr.mxu0 %v689_v30  ;;  %v1136_v17 = vld [vmem:[%s1977_s6] ss:$0 sm:$0xff]  ;;  %v881_v27 = vld [vmem:[#allocation11] sm:$0xff] }
  0x96   : > { %1253 = vmatprep.subr.mxu1 %v585_v18  ;;  %1281 = vmatpush3.msra.mxu0 %v689_v30  ;;  %v1137_v28 = vld [vmem:[%s1979_s8] ss:$0 sm:$0xff] }
  0x97   : > { %1254 = vmatpush3.msra.mxu1 %v585_v18  ;;  %1282 = vmatprep.subr.mxu0 %v688_v31 }
  0x98   : > { %1255 = vmatprep.subr.mxu1 %v584_v19  ;;  %1283 = vmatpush3.msra.mxu0 %v688_v31 }
  0x99   : > { %1256 = vmatpush3.msra.mxu1 %v584_v19  ;;  %1284 = vmatprep.subr.mxu0 %v687_v32 }
  0x9a   : > { %1257 = vmatprep.subr.mxu1 %v583_v20  ;;  %1285 = vmatpush3.msra.mxu0 %v687_v32 }
  0x9b   : > { %1258 = vmatpush3.msra.mxu1 %v583_v20  ;;  %1286 = vmatprep.subr.mxu0 %v686_v33 }
  0x9c   : > { %1259 = vmatprep.subr.mxu1 %v582_v21  ;;  %1287 = vmatpush3.msra.mxu0 %v686_v33 }
  0x9d   : > { %1260 = vmatpush3.msra.mxu1 %v582_v21  ;;  %1288 = vmatprep.subr.mxu0 %v685_v34 }
  0x9e   : > { %1261 = vmatprep.subr.mxu1 %v581_v22  ;;  %1289 = vmatpush3.msra.mxu0 %v685_v34 }
  0x9f   : > { %1262 = vmatpush3.msra.mxu1 %v581_v22  ;;  %1290 = vmatprep.subr.mxu0 %v684_v42 }
  0xa0   : > { %1291 = vmatpush3.msra.mxu0 %v684_v42  ;;  %1301 = vmatprep.subr.mxu1 %v796_v46 }
  0xa1   : > { %1292 = vmatprep.subr.mxu0 %v683_v43 }
  0xa2   : > { %1293 = vmatpush3.msra.mxu0 %v683_v43 }
  0xa3   : > { %1294 = vmatprep.subr.mxu0 %v682_v44 }
  0xa4   : > { %1295 = vmatpush3.msra.mxu0 %v682_v44 }
  0xa5   : > { %1296 = vmatprep.subr.mxu0 %v681_v45 }
  0xa6   : > { %1297 = vmatpush3.msra.mxu0 %v681_v45 }
  0xa7   : > { %1336 = vmatprep.subr.mxu0 %v896_v5 }
 0x146   : > { %v1230_v36 = vpop.f32.mrf.mxu0 }
 0x147   : > { %v576_v37 = vadd.f32 %v1230_v36, %v1132_v35 }
 0x148   : > { %v570_v38 = vpop.f32.mrf.mxu0 }
 0x149   : > { %v571_v39 = vadd.f32 %v1132_v35, %v570_v38  ;;  %v580_v41 = vmax.f32 %v576_v37, 0.0  ;;  %v1138_v35 = vld [vmem:[#allocation2] ss:$0 sm:$0xff] }
 0x14b   : > { %v579_v40 = vmax.f32 %v571_v39, 0.0 }
 0x14d   : > { %1263 = vmatprep.mubr.f32.mxu1 %v579_v40 }
 0x14e   : > { %1264 = vmatmul.mubr.f32.vlgmr.msra.gmra.mxu1 %v580_v41 }
 0x14f   : > { %1302 = vmatpush3.msra.mxu1 %v796_v46 }
 0x150   : > { %1303 = vmatprep.subr.mxu1 %v795_v47 }
 0x151   : > { %1304 = vmatpush3.msra.mxu1 %v795_v47 }
 0x152   : > { %1305 = vmatprep.subr.mxu1 %v794_v48 }
 0x153   : > { %1306 = vmatpush3.msra.mxu1 %v794_v48 }
 0x154   : > { %1307 = vmatprep.subr.mxu1 %v793_v49 }
 0x155   : > { %1308 = vmatpush3.msra.mxu1 %v793_v49 }
 0x156   : > { %1309 = vmatprep.subr.mxu1 %v792_v50 }
 0x157   : > { %1310 = vmatpush3.msra.mxu1 %v792_v50 }
 0x158   : > { %1311 = vmatprep.subr.mxu1 %v791_v51 }
 0x159   : > { %1312 = vmatpush3.msra.mxu1 %v791_v51 }
 0x15a   : > { %1313 = vmatprep.subr.mxu1 %v790_v52 }
 0x15b   : > { %1314 = vmatpush3.msra.mxu1 %v790_v52 }
 0x15c   : > { %1315 = vmatprep.subr.mxu1 %v789_v53 }
 0x15d   : > { %1316 = vmatpush3.msra.mxu1 %v789_v53 }
 0x15e   : > { %1317 = vmatprep.subr.mxu1 %v788_v54 }
 0x15f   : > { %1318 = vmatpush3.msra.mxu1 %v788_v54 }
 0x160   : > { %1319 = vmatprep.subr.mxu1 %v787_v55 }
 0x161   : > { %1320 = vmatpush3.msra.mxu1 %v787_v55 }
 0x162   : > { %1321 = vmatprep.subr.mxu1 %v786_v56 }
 0x163   : > { %1322 = vmatpush3.msra.mxu1 %v786_v56 }
 0x164   : > { %1323 = vmatprep.subr.mxu1 %v785_v57 }
 0x165   : > { %1324 = vmatpush3.msra.mxu1 %v785_v57 }
 0x166   : > { %1325 = vmatprep.subr.mxu1 %v784_v1 }
 0x167   : > { %1326 = vmatpush3.msra.mxu1 %v784_v1 }
 0x168   : > { %1327 = vmatprep.subr.mxu1 %v783_v2 }
 0x169   : > { %1328 = vmatpush3.msra.mxu1 %v783_v2 }
 0x16a   : > { %1329 = vmatprep.subr.mxu1 %v782_v3 }
 0x16b   : > { %1330 = vmatpush3.msra.mxu1 %v782_v3 }
 0x16c   : > { %1331 = vmatprep.subr.mxu1 %v781_v4 }
 0x16d   : > { %1332 = vmatpush3.msra.mxu1 %v781_v4 }
 0x20e   : > { %v1265_v59 = vpop.f32.mrf.mxu1 }
 0x20f   : > { %v676_v60 = vadd.f32 %v1265_v59, %v1135_v58 }
 0x210   : > { %v670_v61 = vpop.f32.mrf.mxu1 }
 0x211   : > { %v671_v62 = vadd.f32 %v1135_v58, %v670_v61  ;;  %v680_v0 = vmax.f32 %v676_v60, 0.0 }
 0x213   : > { %v679_v63 = vmax.f32 %v671_v62, 0.0 }
 0x215   : > { %1298 = vmatprep.mubr.f32.mxu0 %v679_v63 }
 0x216   : > { %1299 = vmatmul.mubr.f32.vlgmr.msra.gmra.mxu0 %v680_v0 }
 0x217   : > { %1337 = vmatpush3.msra.mxu0 %v896_v5 }
 0x218   : > { %1338 = vmatprep.subr.mxu0 %v895_v6 }
 0x219   : > { %1339 = vmatpush3.msra.mxu0 %v895_v6 }
 0x21a   : > { %1340 = vmatprep.subr.mxu0 %v894_v7 }
 0x21b   : > { %1341 = vmatpush3.msra.mxu0 %v894_v7 }
 0x21c   : > { %1342 = vmatprep.subr.mxu0 %v893_v8 }
 0x21d   : > { %1343 = vmatpush3.msra.mxu0 %v893_v8 }
 0x21e   : > { %1344 = vmatprep.subr.mxu0 %v892_v9 }
 0x21f   : > { %1345 = vmatpush3.msra.mxu0 %v892_v9 }
 0x220   : > { %1346 = vmatprep.subr.mxu0 %v891_v10 }
 0x221   : > { %1347 = vmatpush3.msra.mxu0 %v891_v10 }
 0x222   : > { %1348 = vmatprep.subr.mxu0 %v890_v11 }
 0x223   : > { %1349 = vmatpush3.msra.mxu0 %v890_v11 }
 0x224   : > { %1350 = vmatprep.subr.mxu0 %v889_v12 }
 0x225   : > { %1351 = vmatpush3.msra.mxu0 %v889_v12 }
 0x226   : > { %1352 = vmatprep.subr.mxu0 %v888_v13 }
 0x227   : > { %1353 = vmatpush3.msra.mxu0 %v888_v13 }
 0x228   : > { %1354 = vmatprep.subr.mxu0 %v887_v14 }
 0x229   : > { %1355 = vmatpush3.msra.mxu0 %v887_v14 }
 0x22a   : > { %1356 = vmatprep.subr.mxu0 %v886_v15 }
 0x22b   : > { %1357 = vmatpush3.msra.mxu0 %v886_v15 }
 0x22c   : > { %1358 = vmatprep.subr.mxu0 %v885_v16 }
 0x22d   : > { %1359 = vmatpush3.msra.mxu0 %v885_v16 }
 0x22e   : > { %1360 = vmatprep.subr.mxu0 %v884_v24 }
 0x22f   : > { %1361 = vmatpush3.msra.mxu0 %v884_v24 }
 0x230   : > { %1362 = vmatprep.subr.mxu0 %v883_v25 }
 0x231   : > { %1363 = vmatpush3.msra.mxu0 %v883_v25 }
 0x232   : > { %1364 = vmatprep.subr.mxu0 %v882_v26 }
 0x233   : > { %1365 = vmatpush3.msra.mxu0 %v882_v26 }
 0x234   : > { %1366 = vmatprep.subr.mxu0 %v881_v27 }
 0x235   : > { %1367 = vmatpush3.msra.mxu0 %v881_v27 }
 0x2d6   : > { %v1300_v18 = vpop.f32.mrf.mxu0 }
 0x2d7   : > { %v776_v19 = vadd.f32 %v1300_v18, %v1136_v17 }
 0x2d8   : > { %v770_v20 = vpop.f32.mrf.mxu0 }
 0x2d9   : > { %v771_v21 = vadd.f32 %v1136_v17, %v770_v20  ;;  %v780_v23 = vmax.f32 %v776_v19, 0.0 }
 0x2db   : > { %v779_v22 = vmax.f32 %v771_v21, 0.0 }
 0x2dd   : > { %1333 = vmatprep.mubr.f32.mxu1 %v779_v22 }
 0x2de   : > { %1334 = vmatmul.mubr.f32.vlgmr.msra.gmra.mxu1 %v780_v23 }
 0x39e   : > { %v1335_v29 = vpop.f32.mrf.mxu1 }
 0x39f   : > { %v876_v30 = vadd.f32 %v1335_v29, %v1137_v28 }
 0x3a0   : > { %v870_v31 = vpop.f32.mrf.mxu1 }
 0x3a1   : > { %v871_v32 = vadd.f32 %v1137_v28, %v870_v31  ;;  %v880_v34 = vmax.f32 %v876_v30, 0.0 }
 0x3a3   : > { %v879_v33 = vmax.f32 %v871_v32, 0.0 }
 0x3a5   : > { %1368 = vmatprep.mubr.f32.mxu0 %v879_v33 }
 0x3a6   : > { %1369 = vmatmul.mubr.f32.vlgmr.msra.gmra.mxu0 %v880_v34 }
 0x466   : > { %v1370_v36 = vpop.f32.mrf.mxu0 }
 0x467   : > { %v980_v37 = vadd.f32 %v1370_v36, %v1138_v35 }
 0x468   : > { %v963_v38 = vpop.f32.mrf.mxu0 }
 0x469   : > { %v982_v39 = vsub.f32 0.0, %v980_v37  ;;  %v979_v40 = vadd.f32 %v1138_v35, %v963_v38 }
 0x46b   : > { %v985_v41 = vmul.f32 1.442695, %v982_v39  ;;  %v981_v42 = vsub.f32 0.0, %v979_v40 }
 0x46d   : > { %1463 = vpow2.f32 %v985_v41  ;;  %v983_v43 = vmul.f32 1.442695, %v981_v42 }
 0x46f   : > { %1465 = vpow2.f32 %v983_v43 }
 0x47a   : > { %v1464_v44 = vpop.eup %1463 }
 0x47b   : > { %v988_v46 = vadd.f32 1.0, %v1464_v44 }
 0x47c   : > { %v1466_v45 = vpop.eup %1465 }
 0x47d   : > { %v987_v47 = vadd.f32 1.0, %v1466_v45 }
 0x47f   : > { %1467 = vrcp.f32 %v987_v47 }
 0x480   : > { %1469 = vrcp.f32 %v988_v46 }
 0x48c   : > { %v1468_v48 = vpop.eup %1467 }
 0x48d   : > { %v1470_v49 = vpop.eup %1469  ;;  %994 = vst.msk [vmem:[%s482_s1] sm:$0xff] %vm993_vm1, %v1468_v48 }
 0x48e   : > { %995 = vst.msk [vmem:[%s482_s1 + $0x8] sm:$0xff] %vm993_vm1, %v1470_v49 }
 0x48f PF: > { %p26_p5 = scmp.ge.s32.totalorder %s1860_s29, 4   ;;  %s2004_s19 = smov %s1667_s20 }
 0x490   : > { %s2005_s20 = smov %s1671_s21  ;;  %s2006_s21 = smov %s1871_s10 }
 0x491   : > { %s2007_s22 = smov %s1860_s29  ;;  %28 = sbr.rel (!%p26_p5) target bundleno = 9 (0x9), region = 124 }
 0x496   :  { %1018 = vsyncpa [#allocation4], 1 }
 0x497   :  { %1020 = vsyncpa [#allocation4 + $0x1], 1 }
 0x498   :  { %1021 = vsyncpa [#allocation6], 1 }
 0x499   :  { %1022 = vsyncpa [#allocation9], 1 }
 0x49a   :  { %1023 = vsyncpa [#allocation12], 1 }

</bundles_post_ra>
